<compile_context>
chip_gen: v7x
topology: tpu7x:2x2x1
jax: 0.10.0
libtpu: 0.0.40
codegen_flags: <defaults>
</compile_context>

<pallas_src>
import functools
from numbers import Number

import numpy as np
import jax
import jax.numpy as jnp
from jax.experimental import pallas as pl
from jax.experimental.pallas import tpu as pltpu

# Abramowitz & Stegun 9.8.1-9.8.4 polynomial coefficients.
_I0_SMALL = (1.0, 3.5156229, 3.0899424, 1.2067492, 0.2659732, 0.0360768,
             0.0045813)
_I0_LARGE = (0.39894228, 0.01328592, 0.00225319, -0.00157565, 0.00916281,
             -0.02057706, 0.02635537, -0.01647633, 0.00392377)
_I1_SMALL = (0.5, 0.87890594, 0.51498869, 0.15084934, 0.02658733, 0.00301532,
             0.00032411)
_I1_LARGE = (0.39894228, -0.03988024, -0.00362018, 0.00163801, -0.01031555,
             0.02282967, -0.02895312, 0.01787654, -0.00420059)


def _poly(coeffs, x):
    """Horner evaluation of sum_k coeffs[k] * x**k (VPU elementwise)."""
    acc = jnp.full_like(x, coeffs[-1])
    for c in reversed(coeffs[:-1]):
        acc = acc * x + c
    return acc


def _ive_kernel(z_ref, o_ref, *, v_int):
    z = z_ref[...].astype(jnp.float32)
    ax = jnp.abs(z)
    t = ax * (1.0 / 3.75)
    t2 = t * t
    # Guard the large-argument branch against rsqrt(0) (both branches of
    # jnp.where are always evaluated).
    ax_safe = jnp.maximum(ax, 3.75)

    # Only two EUP ops per element: rsqrt + exp.  1/ax comes from rsqrt^2
    # (one VALU mul) instead of a third EUP reciprocal.
    rsqrt_ax = jax.lax.rsqrt(ax_safe)                # EUP
    inv_t = (rsqrt_ax * rsqrt_ax) * 3.75             # 3.75 / ax, exact-ish, VALU
    exp_neg = jnp.exp(-ax)                           # EUP

    if v_int == 0:
        small = _poly(_I0_SMALL, t2) * exp_neg       # i0(x)*exp(-x), x < 3.75
        large = _poly(_I0_LARGE, inv_t) * rsqrt_ax   # exp-scaled, x >= 3.75
        out = jnp.where(ax < 3.75, small, large)
    else:  # v_int == 1
        small = ax * _poly(_I1_SMALL, t2) * exp_neg
        large = _poly(_I1_LARGE, inv_t) * rsqrt_ax
        out = jnp.where(ax < 3.75, small, large)
        # i1e is odd in z: copy z's sign bit onto |i1e| via bit ops
        # (cheaper than compare + negate + select on the VALU).
        sign = pltpu.bitcast(z, jnp.uint32) & jnp.uint32(0x80000000)
        out = pltpu.bitcast(pltpu.bitcast(out, jnp.uint32) ^ sign, jnp.float32)

    o_ref[...] = out.astype(o_ref.dtype)


# Per-block footprint cap (f32-equivalent bytes).  in + out double-buffered
# = 4 x 4 MiB = 16 MiB, which fits the explicit 32 MiB scoped-VMEM limit set
# below on every chip generation (v7x physical VMEM is 64 MiB).
_MAX_BLOCK_BYTES = 4 * 1024 * 1024
_MULTI_TC_MIN_STEPS = 8   # keep enough grid steps to shard across v7x's 2 TCs


def _is_multi_tensorcore():
    """True only for chips with >1 TensorCore per device (v7x)."""
    try:
        kind = jax.devices()[0].device_kind.lower()
    except Exception:
        return False
    return ("v7" in kind) or ("tpu7" in kind)


def _grid_semantics(multi_tc):
    # Plain "parallel" is a measured near no-op; only CORE_PARALLEL actually
    # shards a grid axis across the two v7x TensorCores.  Single-TC chips
    # (v5e/v6e) just get the harmless default.
    if multi_tc:
        return (pltpu.CORE_PARALLEL,)
    return (pltpu.PARALLEL,)


def _slab_geometry(n, itemsize, multi_tc):
    """Pick a lane-dense (rows, lanes) slab, block height and grid size."""
    lanes = 1024
    while lanes > 128 and n < lanes * 8:
        lanes //= 2
    rows = max(1, pl.cdiv(n, lanes))

    # Sublane packing of the *input* dtype: 8 for 32-bit, 16 for 16-bit,
    # 32 for 8-bit (the input BlockSpec uses the native dtype).
    sublane = 8 * max(1, 4 // max(1, itemsize))
    max_block_rows = max(
        sublane, (_MAX_BLOCK_BYTES // (lanes * 4)) // sublane * sublane)

    if rows <= max_block_rows and (not multi_tc or rows <= sublane):
        # Single full-height block (full-extent block dims are always legal,
        # no sublane-multiple requirement).  No per-step grid overhead.
        block_rows = rows
    else:
        min_steps = _MULTI_TC_MIN_STEPS if multi_tc else 1
        target_rows = pl.cdiv(rows, min_steps)
        block_rows = min(max_block_rows,
                         pl.cdiv(target_rows, sublane) * sublane)

    grid = pl.cdiv(rows, block_rows)   # partial last block is masked by Pallas
    return rows, lanes, block_rows, grid


def ive(v, z):
    """Elementwise I_v(z) * exp(-|z|) on TPU via Pallas (v must be 0 or 1)."""
    assert isinstance(v, Number), "v must be a scalar"
    if np.isclose(v, 0):
        v_int = 0
    elif np.isclose(v, 1):
        v_int = 1
    else:
        # TODO(synk): general (non-0/1) order ive has no clean closed-form
        # polynomial kernel; only v=0 / v=1 are implemented here.
        raise NotImplementedError("only v in {0, 1} supported in-kernel")

    z = jnp.asarray(z)
    orig_shape = z.shape
    in_dtype = z.dtype
    # Match the input dtype for float inputs (no silent store-side upcast).
    out_dtype = in_dtype if jnp.issubdtype(in_dtype, jnp.floating) \
        else jnp.float32

    flat = jnp.ravel(z)                  # keep native dtype; kernel casts
    n = flat.shape[0]
    if n == 0:
        return jnp.zeros(orig_shape, out_dtype)

    multi_tc = _is_multi_tensorcore()
    itemsize = jnp.dtype(in_dtype).itemsize
    rows, lanes, block_rows, grid = _slab_geometry(n, itemsize, multi_tc)

    # Only lane-raggedness (n % lanes != 0) needs a pad; rows are never padded
    # up to a block multiple anymore (partial last block handled in-kernel).
    pad = rows * lanes - n
    if pad:
        flat = jnp.pad(flat, (0, pad))
    z2d = flat.reshape(rows, lanes)

    out2d = pl.pallas_call(
        functools.partial(_ive_kernel, v_int=v_int),
        out_shape=jax.ShapeDtypeStruct((rows, lanes), out_dtype),
        grid=(grid,),
        in_specs=[pl.BlockSpec((block_rows, lanes), lambda i: (i, 0))],
        out_specs=pl.BlockSpec((block_rows, lanes), lambda i: (i, 0)),
        compiler_params=pltpu.CompilerParams(
            dimension_semantics=_grid_semantics(multi_tc),
            vmem_limit_bytes=32 * 1024 * 1024),
    )(z2d)

    if pad:
        return out2d.reshape(-1)[:n].reshape(orig_shape)
    return out2d.reshape(orig_shape)


class Ive:
    """JAX/Pallas port of the PyTorch `Ive` module (forward only)."""

    def __init__(self, v):
        self.v = v

    def __call__(self, z):
        return ive(self.v, z)


if __name__ == "__main__":
    key = jax.random.PRNGKey(0)
    k0, k1 = jax.random.split(key)

    # kappa-like positive concentrations, shape consistent with the module's
    # elementwise forward.
    z = jax.random.uniform(k0, (2, 4, 16, 16), dtype=jnp.float32,
                           minval=0.1, maxval=20.0)

    mod0 = Ive(0)
    mod1 = Ive(1)
    y0 = jax.block_until_ready(mod0(z))
    y1 = jax.block_until_ready(mod1(z))

    ref0 = jax.scipy.special.i0e(z)
    ref1 = jax.scipy.special.i1e(z)
    assert y0.shape == z.shape and y1.shape == z.shape
    np.testing.assert_allclose(np.asarray(y0), np.asarray(ref0),
                               rtol=5e-4, atol=1e-5)
    np.testing.assert_allclose(np.asarray(y1), np.asarray(ref1),
                               rtol=5e-4, atol=1e-5)

    # Ragged, mixed-sign check (exercises the pad/slice path, the full-extent
    # block case, and the sign-bit XOR for odd i1e).
    zr = jax.random.uniform(k1, (257,), dtype=jnp.float32,
                            minval=-15.0, maxval=15.0)
    yr0 = jax.block_until_ready(mod0(zr))
    yr1 = jax.block_until_ready(mod1(zr))
    np.testing.assert_allclose(np.asarray(yr0),
                               np.asarray(jax.scipy.special.i0e(zr)),
                               rtol=5e-4, atol=1e-5)
    np.testing.assert_allclose(np.asarray(yr1),
                               np.asarray(jax.scipy.special.i1e(zr)),
                               rtol=5e-4, atol=1e-5)

    print("KERNEL_OK")
</pallas_src>

<mosaic_0001>
module attributes {stable_mosaic.version = 11 : i64} {
  func.func @_ive_kernel(%arg0: i32, %arg1: memref<8x256xf32, #tpu.memory_space<vmem>>, %arg2: memref<8x256xf32, #tpu.memory_space<vmem>>) attributes {dimension_semantics = [#tpu.dimension_semantics<parallel>], iteration_bounds = array<i64: 1>, scalar_prefetch = 0 : i64, scratch_operands = 0 : i64, tpu.core_type = #tpu.core_type<tc>, window_params = [{transform_indices = @transform_0, window_bounds = array<i64: 8, 256>}, {transform_indices = @transform_1, window_bounds = array<i64: 8, 256>}]} {
    %c0 = arith.constant 0 : index
    %c0_0 = arith.constant 0 : index
    %0 = vector.load %arg1[%c0, %c0_0] : memref<8x256xf32, #tpu.memory_space<vmem>>, vector<8x256xf32>
    %1 = math.absf %0 : vector<8x256xf32>
    %cst = arith.constant 0.266666681 : f32
    %2 = vector.broadcast %cst : f32 to vector<8x256xf32>
    %3 = arith.mulf %1, %2 : vector<8x256xf32>
    %4 = arith.mulf %3, %3 : vector<8x256xf32>
    %cst_1 = arith.constant 3.750000e+00 : f32
    %5 = vector.broadcast %cst_1 : f32 to vector<8x256xf32>
    %6 = arith.maximumf %1, %5 : vector<8x256xf32>
    %7 = math.rsqrt %6 : vector<8x256xf32>
    %8 = arith.mulf %7, %7 : vector<8x256xf32>
    %cst_2 = arith.constant 3.750000e+00 : f32
    %9 = vector.broadcast %cst_2 : f32 to vector<8x256xf32>
    %10 = arith.mulf %8, %9 : vector<8x256xf32>
    %cst_3 = arith.constant 0.000000e+00 : f32
    %11 = vector.broadcast %cst_3 : f32 to vector<8x256xf32>
    %12 = arith.subf %11, %1 : vector<8x256xf32>
    %13 = math.exp %12 : vector<8x256xf32>
    %cst_4 = arith.constant 4.581300e-03 : f32
    %14 = vector.broadcast %cst_4 : f32 to vector<8x256xf32>
    %15 = arith.mulf %14, %4 : vector<8x256xf32>
    %cst_5 = arith.constant 3.607680e-02 : f32
    %16 = vector.broadcast %cst_5 : f32 to vector<8x256xf32>
    %17 = arith.addf %15, %16 : vector<8x256xf32>
    %18 = arith.mulf %17, %4 : vector<8x256xf32>
    %cst_6 = arith.constant 0.26597321 : f32
    %19 = vector.broadcast %cst_6 : f32 to vector<8x256xf32>
    %20 = arith.addf %18, %19 : vector<8x256xf32>
    %21 = arith.mulf %20, %4 : vector<8x256xf32>
    %cst_7 = arith.constant 1.2067492 : f32
    %22 = vector.broadcast %cst_7 : f32 to vector<8x256xf32>
    %23 = arith.addf %21, %22 : vector<8x256xf32>
    %24 = arith.mulf %23, %4 : vector<8x256xf32>
    %cst_8 = arith.constant 3.08994246 : f32
    %25 = vector.broadcast %cst_8 : f32 to vector<8x256xf32>
    %26 = arith.addf %24, %25 : vector<8x256xf32>
    %27 = arith.mulf %26, %4 : vector<8x256xf32>
    %cst_9 = arith.constant 3.51562285 : f32
    %28 = vector.broadcast %cst_9 : f32 to vector<8x256xf32>
    %29 = arith.addf %27, %28 : vector<8x256xf32>
    %30 = arith.mulf %29, %4 : vector<8x256xf32>
    %cst_10 = arith.constant 1.000000e+00 : f32
    %31 = vector.broadcast %cst_10 : f32 to vector<8x256xf32>
    %32 = arith.addf %30, %31 : vector<8x256xf32>
    %33 = arith.mulf %32, %13 : vector<8x256xf32>
    %cst_11 = arith.constant 3.923770e-03 : f32
    %34 = vector.broadcast %cst_11 : f32 to vector<8x256xf32>
    %35 = arith.mulf %34, %10 : vector<8x256xf32>
    %cst_12 = arith.constant -0.0164763294 : f32
    %36 = vector.broadcast %cst_12 : f32 to vector<8x256xf32>
    %37 = arith.addf %35, %36 : vector<8x256xf32>
    %38 = arith.mulf %37, %10 : vector<8x256xf32>
    %cst_13 = arith.constant 0.0263553709 : f32
    %39 = vector.broadcast %cst_13 : f32 to vector<8x256xf32>
    %40 = arith.addf %38, %39 : vector<8x256xf32>
    %41 = arith.mulf %40, %10 : vector<8x256xf32>
    %cst_14 = arith.constant -0.0205770601 : f32
    %42 = vector.broadcast %cst_14 : f32 to vector<8x256xf32>
    %43 = arith.addf %41, %42 : vector<8x256xf32>
    %44 = arith.mulf %43, %10 : vector<8x256xf32>
    %cst_15 = arith.constant 0.00916280969 : f32
    %45 = vector.broadcast %cst_15 : f32 to vector<8x256xf32>
    %46 = arith.addf %44, %45 : vector<8x256xf32>
    %47 = arith.mulf %46, %10 : vector<8x256xf32>
    %cst_16 = arith.constant -1.575650e-03 : f32
    %48 = vector.broadcast %cst_16 : f32 to vector<8x256xf32>
    %49 = arith.addf %47, %48 : vector<8x256xf32>
    %50 = arith.mulf %49, %10 : vector<8x256xf32>
    %cst_17 = arith.constant 2.253190e-03 : f32
    %51 = vector.broadcast %cst_17 : f32 to vector<8x256xf32>
    %52 = arith.addf %50, %51 : vector<8x256xf32>
    %53 = arith.mulf %52, %10 : vector<8x256xf32>
    %cst_18 = arith.constant 0.01328592 : f32
    %54 = vector.broadcast %cst_18 : f32 to vector<8x256xf32>
    %55 = arith.addf %53, %54 : vector<8x256xf32>
    %56 = arith.mulf %55, %10 : vector<8x256xf32>
    %cst_19 = arith.constant 0.398942292 : f32
    %57 = vector.broadcast %cst_19 : f32 to vector<8x256xf32>
    %58 = arith.addf %56, %57 : vector<8x256xf32>
    %59 = arith.mulf %58, %7 : vector<8x256xf32>
    %cst_20 = arith.constant 3.750000e+00 : f32
    %60 = vector.broadcast %cst_20 : f32 to vector<8x256xf32>
    %61 = arith.cmpf olt, %1, %60 : vector<8x256xf32>
    %62 = arith.select %61, %33, %59 : vector<8x256xi1>, vector<8x256xf32>
    %c0_21 = arith.constant 0 : index
    %c0_22 = arith.constant 0 : index
    %63 = vector.load %arg2[%c0_21, %c0_22] : memref<8x256xf32, #tpu.memory_space<vmem>>, vector<8x256xf32>
    tpu.vector_store %arg2[%c0_21, %c0_22], %62 {strides = array<i32>} : memref<8x256xf32, #tpu.memory_space<vmem>>, vector<8x256xf32>,
    return
  }
  func.func @transform_0(%arg0: i32) -> (i32, i32) {
    %c0_i32 = arith.constant 0 : i32
    %c0_i32_0 = arith.constant 0 : i32
    return %arg0, %c0_i32 : i32, i32
  }
  func.func @transform_1(%arg0: i32) -> (i32, i32) {
    %c0_i32 = arith.constant 0 : i32
    %c0_i32_0 = arith.constant 0 : i32
    return %arg0, %c0_i32 : i32, i32
  }
}

</mosaic_0001>

<bundles_post_ra>
// kernel: tpu_custom_call.1
= control target key start
LH: loop header
LB: loop body
LE: loop exit
PB: predicated region body
PF: predicated region fallthrough
CT: control target
= control target key end

     0   :  { %6 = vsyncpa [#allocation3], 0  ;;  %s240_s0 = inlined_call_operand.hbm [shape: f32[8,256], index: 0, kind: input, shape index: {}]   ;;  %s241_s1 = inlined_call_operand.hbm [shape: f32[8,256], index: 1, kind: output, shape index: {}]  }
   0x1   :  { %7 = vsyncpa [#allocation4], 0  ;;  %s182_s6 = smov [#allocation2]   ;;  %s134_s10 = scalar_lea.hbm %s240_s0, 256 }
   0x2   :  { %s14_s7 = sshll.u32 %s182_s6, 4  ;;  %p135_p0 = scmp.ne.s32.totalorder %s240_s0, %s134_s10  ;;  %s15_s7 = int_to_ptr.vmem [resolvable:$true] %s14_s7 }
   0x3   :  { %p138_p1 = scmp.lt.u32.totalorder %s134_s10, %s240_s0 }
   0x5   :  { %p140_p2 = pnand %p138_p1, %p135_p0 }
   0x7   :  { %143 = shalt.err (!%p140_p2)
}
   0x8   :  { %s144_s15 = scalar_lea.vmem %s15_s7, 256  ;;  %p149_p4 = scmp.lt.s32.totalorder %s15_s7, %s15_s7 }
   0x9   :  { %p145_p3 = scmp.ne.s32.totalorder %s15_s7, %s144_s15  ;;  %p150_p5 = scmp.lt.s32.totalorder %s144_s15, %s144_s15 }
   0xb   :  { %p151_p6 = por %p150_p5, %p149_p4 }
   0xd   :  { %p152_p7 = pnand %p151_p6, %p145_p3 }
   0xf   :  { %155 = shalt.err (!%p152_p7)
}
  0x10   :  { %17 = dma.hbm_to_vmem [thread:$0]  %s240_s0, 256, %s15_s7, [#allocation3]  }
  0x11   :  { %178 = dma.done.wait [#allocation3], 256  }
  0x12   :  { %179 = vsyncadd [#allocation3], 4294967040  ;;  %v21_v0 = vld [vmem:[#allocation2] sm:$0xff]  ;;  %v22_v1 = vld [vmem:[#allocation2 + $0x8] sm:$0xff]  ;;  %s183_s0 = smov [#allocation5]  }
  0x13   :  { %v206_v2 = vand.u32 2147483647, %v21_v0  ;;  %v208_v3 = vand.u32 2147483647, %v22_v1  ;;  %s115_s18 = sshll.u32 %s183_s0, 4  ;;  %s116_s18 = int_to_ptr.vmem [resolvable:$true] %s115_s18 }
  0x14   :  { %s156_s19 = scalar_lea.vmem %s116_s18, 256  ;;  %p161_p9 = scmp.lt.s32.totalorder %s116_s18, %s116_s18 }
  0x15   :  { %v25_v4 = vmul.f32 0.26666668, %v206_v2  ;;  %v29_v5 = vmax.f32 %v206_v2, 3.75  ;;  %v26_v6 = vmul.f32 0.26666668, %v208_v3  ;;  %v30_v7 = vmax.f32 %v208_v3, 3.75  ;;  %p157_p8 = scmp.ne.s32.totalorder %s116_s18, %s156_s19  ;;  %p162_p10 = scmp.lt.s32.totalorder %s156_s19, %s156_s19 }
  0x16   :  { %v37_v39 = vsub.f32 0.0, %v206_v2  ;;  %v38_v43 = vsub.f32 0.0, %v208_v3  ;;  %vm103_vm0 = vcmp.lt.f32.partialorder %v206_v2, 3.75  ;;  %vm104_vm1 = vcmp.lt.f32.partialorder %v208_v3, 3.75 }
  0x17   :  { %v27_v8 = vmul.f32 %v25_v4, %v25_v4  ;;  %126 = vrsqrt.f32 %v29_v5  ;;  %v28_v9 = vmul.f32 %v26_v6, %v26_v6  ;;  %p163_p11 = por %p162_p10, %p161_p9 }
  0x18   :  { %128 = vrsqrt.f32 %v30_v7  ;;  %v39_v47 = vmul.f32 1.442695, %v37_v39  ;;  %v41_v51 = vmul.f32 1.442695, %v38_v43 }
  0x19   :  { %v43_v10 = vmul.f32 0.0045813, %v27_v8  ;;  %v44_v11 = vmul.f32 0.0045813, %v28_v9  ;;  %p164_p12 = pnand %p163_p11, %p157_p8 }
  0x1a   :  { %130 = vpow2.f32 %v39_v47 }
  0x1b   :  { %v45_v12 = vadd.f32 0.0360768, %v43_v10  ;;  %v46_v13 = vadd.f32 0.0360768, %v44_v11  ;;  %132 = vpow2.f32 %v41_v51 }
  0x1d   :  { %v47_v14 = vmul.f32 %v45_v12, %v27_v8  ;;  %v48_v15 = vmul.f32 %v46_v13, %v28_v9 }
  0x1f   :  { %v49_v16 = vadd.f32 0.2659732, %v47_v14  ;;  %v50_v18 = vadd.f32 0.2659732, %v48_v15 }
  0x21   :  { %v214_v17 = vpop.eup %126  ;;  %v51_v23 = vmul.f32 %v49_v16, %v27_v8  ;;  %v52_v25 = vmul.f32 %v50_v18, %v28_v9 }
  0x22   :  { %v216_v19 = vpop.eup %128  ;;  %v33_v20 = vmul.f32 %v214_v17, %v214_v17 }
  0x23   :  { %v34_v21 = vmul.f32 %v216_v19, %v216_v19  ;;  %v53_v28 = vadd.f32 1.2067492, %v51_v23  ;;  %v54_v30 = vadd.f32 1.2067492, %v52_v25 }
  0x24   :  { %v35_v22 = vmul.f32 3.75, %v33_v20  ;;  %v131_v10 = vpop.eup %130 }
  0x25   :  { %v36_v24 = vmul.f32 3.75, %v34_v21  ;;  %v55_v34 = vmul.f32 %v53_v28, %v27_v8  ;;  %v56_v36 = vmul.f32 %v54_v30, %v28_v9  ;;  %v133_v13 = vpop.eup %132 }
  0x26   :  { %v69_v26 = vmul.f32 0.00392377, %v35_v22 }
  0x27   :  { %v70_v27 = vmul.f32 0.00392377, %v36_v24  ;;  %v57_v41 = vadd.f32 3.0899425, %v55_v34  ;;  %v58_v44 = vadd.f32 3.0899425, %v56_v36 }
  0x28   :  { %v71_v29 = vadd.f32 -0.01647633, %v69_v26 }
  0x29   :  { %v72_v31 = vadd.f32 -0.01647633, %v70_v27  ;;  %v59_v49 = vmul.f32 %v57_v41, %v27_v8  ;;  %v60_v52 = vmul.f32 %v58_v44, %v28_v9 }
  0x2a   :  { %v73_v32 = vmul.f32 %v71_v29, %v35_v22 }
  0x2b   :  { %v74_v33 = vmul.f32 %v72_v31, %v36_v24  ;;  %v61_v56 = vadd.f32 3.5156229, %v59_v49  ;;  %v62_v58 = vadd.f32 3.5156229, %v60_v52 }
  0x2c   :  { %v75_v35 = vadd.f32 0.02635537, %v73_v32 }
  0x2d   :  { %v76_v37 = vadd.f32 0.02635537, %v74_v33  ;;  %v63_v62 = vmul.f32 %v61_v56, %v27_v8  ;;  %v64_v0 = vmul.f32 %v62_v58, %v28_v9 }
  0x2e   :  { %v77_v38 = vmul.f32 %v75_v35, %v35_v22 }
  0x2f   :  { %v78_v40 = vmul.f32 %v76_v37, %v36_v24  ;;  %v65_v6 = vadd.f32 1.0, %v63_v62  ;;  %v66_v11 = vadd.f32 1.0, %v64_v0 }
  0x30   :  { %v79_v42 = vadd.f32 -0.02057706, %v77_v38 }
  0x31   :  { %v80_v45 = vadd.f32 -0.02057706, %v78_v40  ;;  %v67_v16 = vmul.f32 %v131_v10, %v65_v6  ;;  %v68_v20 = vmul.f32 %v133_v13, %v66_v11 }
  0x32   :  { %v81_v46 = vmul.f32 %v79_v42, %v35_v22 }
  0x33   :  { %v82_v48 = vmul.f32 %v80_v45, %v36_v24 }
  0x34   :  { %v83_v50 = vadd.f32 0.00916281, %v81_v46 }
  0x35   :  { %v84_v53 = vadd.f32 0.00916281, %v82_v48 }
  0x36   :  { %v85_v54 = vmul.f32 %v83_v50, %v35_v22 }
  0x37   :  { %v86_v55 = vmul.f32 %v84_v53, %v36_v24 }
  0x38   :  { %v87_v57 = vadd.f32 -0.00157565, %v85_v54 }
  0x39   :  { %v88_v59 = vadd.f32 -0.00157565, %v86_v55 }
  0x3a   :  { %v89_v60 = vmul.f32 %v87_v57, %v35_v22 }
  0x3b   :  { %v90_v61 = vmul.f32 %v88_v59, %v36_v24 }
  0x3c   :  { %v91_v63 = vadd.f32 0.00225319, %v89_v60 }
  0x3d   :  { %v92_v1 = vadd.f32 0.00225319, %v90_v61 }
  0x3e   :  { %v93_v4 = vmul.f32 %v91_v63, %v35_v22 }
  0x3f   :  { %v94_v5 = vmul.f32 %v92_v1, %v36_v24 }
  0x40   :  { %v95_v7 = vadd.f32 0.01328592, %v93_v4 }
  0x41   :  { %v96_v12 = vadd.f32 0.01328592, %v94_v5 }
  0x42   :  { %v97_v14 = vmul.f32 %v95_v7, %v35_v22 }
  0x43   :  { %v98_v15 = vmul.f32 %v96_v12, %v36_v24 }
  0x44   :  { %v99_v18 = vadd.f32 0.3989423, %v97_v14 }
  0x45   :  { %v100_v21 = vadd.f32 0.3989423, %v98_v15 }
  0x46   :  { %v101_v8 = vmul.f32 %v214_v17, %v99_v18 }
  0x47   :  { %v102_v9 = vmul.f32 %v216_v19, %v100_v21 }
  0x48   :  { %v105_v23 = vsel %vm103_vm0, %v67_v16, %v101_v8 }
  0x49   :  { %107 = vst [vmem:[#allocation5] sm:$0xff] %v105_v23  ;;  %v106_v25 = vsel %vm104_vm1, %v68_v20, %v102_v9 }
  0x4a   :  { %108 = vst [vmem:[#allocation5 + $0x8] sm:$0xff] %v106_v25 }
  0x4b   :  { %167 = shalt.err (!%p164_p12)
}
  0x4c   :  { %s168_s22 = scalar_lea.hbm %s241_s1, 256 }
  0x4d   :  { %p169_p13 = scmp.ne.s32.totalorder %s241_s1, %s168_s22  ;;  %p172_p0 = scmp.lt.u32.totalorder %s168_s22, %s241_s1 }
  0x4f   :  { %p174_p1 = pnand %p172_p0, %p169_p13 }
  0x51   :  { %177 = shalt.err (!%p174_p1)
}
  0x52   :  { %118 = dma.vmem_to_hbm [thread:$0]  %s116_s18, 256, %s241_s1, [#allocation4]  }
  0x53   :  { %180 = dma.done.wait [#allocation4], 256  }
  0x54   :  { %181 = vsyncadd [#allocation4], 4294967040 }
  0x55   :  { %122 = vsyncpa [#allocation3], 1 }
  0x56   :  { %123 = vsyncpa [#allocation4], 1 }

</bundles_post_ra>
